<compile_context>
chip_gen: v7x
topology: tpu7x:2x2x1
jax: 0.10.0
libtpu: 0.0.40
codegen_flags: <defaults>
</compile_context>

<pallas_src>
import functools

import numpy as np
import jax
import jax.numpy as jnp
from jax.experimental import pallas as pl
from jax.experimental.pallas import tpu as pltpu


def _hash_router_kernel(x_ref, w_ref, b_ref, sel_ref, idx_ref, *,
                        num_experts, num_selected):
    E = num_experts
    K = num_selected
    pow2 = E > 0 and (E & (E - 1)) == 0

    def mod_e(v):
        # Power-of-two modulo -> single AND on the VPU.
        return (v & (E - 1)) if pow2 else (v % E)

    # Hash projection on the MXU: [TT, H] @ [H, K*32] + bias.
    x = x_ref[...]
    y = jnp.dot(x, w_ref[...],
                preferred_element_type=jnp.float32) + b_ref[...]      # [TT, K*32]

    # Threshold -> bits, then popcount each 32-wide group with one small
    # matmul against the static block-diagonal selector (second MXU op; avoids
    # reshapes / XLU group reductions on the VPU side).
    bits = (y > 0).astype(jnp.float32)                                 # [TT, K*32]
    counts = jnp.dot(bits, sel_ref[...],
                     preferred_element_type=jnp.float32)               # [TT, K]
    counts = counts.astype(jnp.int32)

    # Unique-expert enforcement (linear probing). Slot i can be displaced at
    # most min(i, E) times: i previously assigned experts, and the PyTorch
    # reference caps attempts at num_experts.
    cols = []
    for i in range(K):
        cand = mod_e(counts[:, i:i + 1])                               # [TT, 1]
        for _ in range(min(i, E)):
            coll = cand == cols[0]
            for prev in cols[1:]:
                coll = jnp.logical_or(coll, cand == prev)
            cand = jnp.where(coll, mod_e(cand + 1), cand)
        cols.append(cand)

    idx = cols[0] if K == 1 else jnp.concatenate(cols, axis=-1)        # [TT, K]
    idx_ref[...] = idx


def hash_router_forward(hidden_states, weight, bias, *, num_experts,
                        num_selected, token_tile=256):
    """hidden_states: [B, S, H] f32; weight: [K*32, H] (PyTorch layout);
    bias: [K*32]. Returns (expert_weights, expert_indices, router_logits, {})."""
    B, S, H = hidden_states.shape
    T = B * S
    K = num_selected
    assert token_tile % 8 == 0, "token_tile must be a multiple of 8"

    x = hidden_states.reshape(T, H).astype(jnp.float32)
    w_t = jnp.asarray(weight, jnp.float32).T                 # [H, K*32]
    b2 = jnp.asarray(bias, jnp.float32).reshape(1, K * 32)   # [1, K*32]

    # Static block-diagonal popcount selector: [K*32, K], ones on group i.
    sel_np = np.zeros((K * 32, K), np.float32)
    for i in range(K):
        sel_np[i * 32:(i + 1) * 32, i] = 1.0
    sel = jnp.asarray(sel_np)

    # Shrink the tile for small inputs (sublane multiple of 8), so tiny
    # batches neither pad nor compute a full 256-row tile.
    tile = min(token_tile, ((T + 7) // 8) * 8)

    # Pad the token axis up to a multiple of the tile only when needed;
    # padded rows are computed (harmlessly) and sliced off below.
    T_pad = ((T + tile - 1) // tile) * tile
    if T_pad != T:
        x = jnp.pad(x, ((0, T_pad - T), (0, 0)))

    grid = (T_pad // tile,)
    kernel = functools.partial(_hash_router_kernel,
                               num_experts=num_experts,
                               num_selected=num_selected)

    idx_pad = pl.pallas_call(
        kernel,
        out_shape=jax.ShapeDtypeStruct((T_pad, K), jnp.int32),
        grid_spec=pltpu.PrefetchScalarGridSpec(
            num_scalar_prefetch=0,
            grid=grid,
            in_specs=[
                pl.BlockSpec((tile, H), lambda t: (t, 0)),         # x tile
                pl.BlockSpec((H, K * 32), lambda t: (0, 0)),       # full weight
                pl.BlockSpec((1, K * 32), lambda t: (0, 0)),       # full bias
                pl.BlockSpec((K * 32, K), lambda t: (0, 0)),       # selector
            ],
            out_specs=pl.BlockSpec((tile, K), lambda t: (t, 0)),
        ),
        compiler_params=pltpu.CompilerParams(
            dimension_semantics=("parallel",),
            # Above the 16/32 MiB scoped defaults so large token tiles keep
            # double-buffering; still leaves headroom on v7x's 64 MiB VMEM.
            vmem_limit_bytes=48 * 1024 * 1024,
        ),
    )(x, w_t, b2, sel)

    expert_indices = idx_pad[:T]
    # TODO(synk): PyTorch returns int64 ("long") indices; int32 kept for TPU.
    # Constant outputs are materialized outside the kernel (no HBM writeback
    # of constants from the kernel).
    expert_weights = jnp.full((T, K), 1.0 / K, dtype=jnp.float32)
    router_logits = jnp.zeros((T, num_experts), jnp.float32)
    aux_loss_dict = {}
    return expert_weights, expert_indices, router_logits, aux_loss_dict


def _reference_forward(x, w_t, b, num_experts, num_selected):
    """Pure numpy replication of the PyTorch HashRouter.forward semantics."""
    T = x.shape[0]
    y = x @ w_t + b                                            # [T, K*32]
    y = y.reshape(T, num_selected, 32)
    bits = (y > 0).astype(np.int64)
    idx = bits.sum(-1) % num_experts
    for t in range(T):
        used = set()
        for i in range(num_selected):
            e = int(idx[t, i])
            attempt = 0
            while e in used and attempt < num_experts:
                e = (e + 1) % num_experts
                attempt += 1
            used.add(e)
            idx[t, i] = e
    weights = np.ones((T, num_selected), np.float32) / num_selected
    logits = np.zeros((T, num_experts), np.float32)
    return weights, idx, logits


if __name__ == "__main__":
    # Small, deterministic config consistent with the module:
    #   num_experts=8, num_selected_experts=2, hidden_size=32, batch=2, seq=8
    NUM_EXPERTS = 8
    NUM_SELECTED = 2
    HIDDEN = 32
    BATCH, SEQ = 2, 8

    key = jax.random.PRNGKey(0)
    k_x, k_w = jax.random.split(key)

    hidden_states = jax.random.normal(k_x, (BATCH, SEQ, HIDDEN), jnp.float32)
    # nn.init.normal_(weight, mean=0.0, std=0.01); bias zeros.
    hash_weight = 0.01 * jax.random.normal(
        k_w, (NUM_SELECTED * 32, HIDDEN), jnp.float32)          # [K*32, H]
    hash_bias = jnp.zeros((NUM_SELECTED * 32,), jnp.float32)

    wts, idx, logits, aux = hash_router_forward(
        hidden_states, hash_weight, hash_bias,
        num_experts=NUM_EXPERTS, num_selected=NUM_SELECTED, token_tile=256)
    jax.block_until_ready((wts, idx, logits))

    # Verify against a pure-numpy reference of the PyTorch semantics.
    x_np = np.asarray(hidden_states).reshape(-1, HIDDEN)
    wt_np = np.asarray(hash_weight).T
    b_np = np.asarray(hash_bias)
    ref_w, ref_i, ref_l = _reference_forward(
        x_np, wt_np, b_np, NUM_EXPERTS, NUM_SELECTED)

    assert np.array_equal(np.asarray(idx), ref_i.astype(np.int32)), "indices mismatch"
    assert np.allclose(np.asarray(wts), ref_w), "weights mismatch"
    assert np.allclose(np.asarray(logits), ref_l), "logits mismatch"
    assert aux == {}

    print("KERNEL_OK")
</pallas_src>

<mosaic_0001>
module attributes {stable_mosaic.version = 11 : i64} {
  func.func @_hash_router_kernel(%arg0: i32, %arg1: memref<16x32xf32, #tpu.memory_space<vmem>>, %arg2: memref<32x64xf32, #tpu.memory_space<vmem>>, %arg3: memref<1x64xf32, #tpu.memory_space<vmem>>, %arg4: memref<64x2xf32, #tpu.memory_space<vmem>>, %arg5: memref<16x2xi32, #tpu.memory_space<vmem>>) attributes {dimension_semantics = [#tpu.dimension_semantics<parallel>], iteration_bounds = array<i64: 1>, scalar_prefetch = 0 : i64, scratch_operands = 0 : i64, tpu.core_type = #tpu.core_type<tc>, window_params = [{transform_indices = @transform_0, window_bounds = array<i64: 16, 32>}, {pipeline_mode = #tpu.pipeline_mode<synchronous>, transform_indices = @transform_1, window_bounds = array<i64: 32, 64>}, {pipeline_mode = #tpu.pipeline_mode<synchronous>, transform_indices = @transform_2, window_bounds = array<i64: 1, 64>}, {pipeline_mode = #tpu.pipeline_mode<synchronous>, transform_indices = @transform_3, window_bounds = array<i64: 64, 2>}, {transform_indices = @transform_4, window_bounds = array<i64: 16, 2>}]} {
    %c0 = arith.constant 0 : index
    %c0_0 = arith.constant 0 : index
    %0 = vector.load %arg1[%c0, %c0_0] : memref<16x32xf32, #tpu.memory_space<vmem>>, vector<16x32xf32>
    %c0_1 = arith.constant 0 : index
    %c0_2 = arith.constant 0 : index
    %1 = vector.load %arg2[%c0_1, %c0_2] : memref<32x64xf32, #tpu.memory_space<vmem>>, vector<32x64xf32>
    %cst = arith.constant dense<0.000000e+00> : vector<16x64xf32>
    %2 = tpu.matmul %0, %1, %cst {dimension_numbers = #tpu.dot_dimension_numbers<[1], [0], [0], [1], [0, 0, 1, 1], [], []>} : vector<16x32xf32>, vector<32x64xf32>, vector<16x64xf32> -> vector<16x64xf32>
    %c0_3 = arith.constant 0 : index
    %c0_4 = arith.constant 0 : index
    %3 = vector.load %arg3[%c0_3, %c0_4] : memref<1x64xf32, #tpu.memory_space<vmem>>, vector<1x64xf32>
    %4 = vector.broadcast %3 : vector<1x64xf32> to vector<16x64xf32>
    %5 = arith.addf %2, %4 : vector<16x64xf32>
    %cst_5 = arith.constant 0.000000e+00 : f32
    %6 = vector.broadcast %cst_5 : f32 to vector<16x64xf32>
    %7 = arith.cmpf ogt, %5, %6 : vector<16x64xf32>
    %8 = arith.extui %7 : vector<16x64xi1> to vector<16x64xi32>
    %9 = arith.sitofp %8 : vector<16x64xi32> to vector<16x64xf32>
    %c0_6 = arith.constant 0 : index
    %c0_7 = arith.constant 0 : index
    %10 = vector.load %arg4[%c0_6, %c0_7] : memref<64x2xf32, #tpu.memory_space<vmem>>, vector<64x2xf32>
    %cst_8 = arith.constant dense<0.000000e+00> : vector<16x2xf32>
    %11 = tpu.matmul %9, %10, %cst_8 {dimension_numbers = #tpu.dot_dimension_numbers<[1], [0], [0], [1], [0, 0, 1, 1], [], []>} : vector<16x64xf32>, vector<64x2xf32>, vector<16x2xf32> -> vector<16x2xf32>
    %12 = arith.fptosi %11 : vector<16x2xf32> to vector<16x2xi32>
    %13 = vector.extract_strided_slice %12 {offsets = [0, 0], sizes = [16, 1], strides = [1, 1]} : vector<16x2xi32> to vector<16x1xi32>
    %c7_i32 = arith.constant 7 : i32
    %14 = vector.broadcast %c7_i32 : i32 to vector<16x1xi32>
    %15 = arith.andi %13, %14 : vector<16x1xi32>
    %16 = vector.extract_strided_slice %12 {offsets = [0, 1], sizes = [16, 1], strides = [1, 1]} : vector<16x2xi32> to vector<16x1xi32>
    %c7_i32_9 = arith.constant 7 : i32
    %17 = vector.broadcast %c7_i32_9 : i32 to vector<16x1xi32>
    %18 = arith.andi %16, %17 : vector<16x1xi32>
    %19 = arith.cmpi eq, %18, %15 : vector<16x1xi32>
    %c1_i32 = arith.constant 1 : i32
    %20 = vector.broadcast %c1_i32 : i32 to vector<16x1xi32>
    %21 = arith.addi %18, %20 : vector<16x1xi32>
    %c7_i32_10 = arith.constant 7 : i32
    %22 = vector.broadcast %c7_i32_10 : i32 to vector<16x1xi32>
    %23 = arith.andi %21, %22 : vector<16x1xi32>
    %24 = arith.select %19, %23, %18 : vector<16x1xi1>, vector<16x1xi32>
    %25 = tpu.concatenate %15, %24 in 1 : vector<16x1xi32>, vector<16x1xi32> -> vector<16x2xi32>
    %c0_11 = arith.constant 0 : index
    %c0_12 = arith.constant 0 : index
    %26 = vector.load %arg5[%c0_11, %c0_12] : memref<16x2xi32, #tpu.memory_space<vmem>>, vector<16x2xi32>
    tpu.vector_store %arg5[%c0_11, %c0_12], %25 {strides = array<i32>} : memref<16x2xi32, #tpu.memory_space<vmem>>, vector<16x2xi32>,
    return
  }
  func.func @transform_0(%arg0: i32) -> (i32, i32) {
    %c0_i32 = arith.constant 0 : i32
    %c0_i32_0 = arith.constant 0 : i32
    return %arg0, %c0_i32 : i32, i32
  }
  func.func @transform_1(%arg0: i32) -> (i32, i32) {
    %c0_i32 = arith.constant 0 : i32
    %c0_i32_0 = arith.constant 0 : i32
    %c0_i32_1 = arith.constant 0 : i32
    return %c0_i32, %c0_i32_0 : i32, i32
  }
  func.func @transform_2(%arg0: i32) -> (i32, i32) {
    %c0_i32 = arith.constant 0 : i32
    %c0_i32_0 = arith.constant 0 : i32
    %c0_i32_1 = arith.constant 0 : i32
    return %c0_i32, %c0_i32_0 : i32, i32
  }
  func.func @transform_3(%arg0: i32) -> (i32, i32) {
    %c0_i32 = arith.constant 0 : i32
    %c0_i32_0 = arith.constant 0 : i32
    %c0_i32_1 = arith.constant 0 : i32
    return %c0_i32, %c0_i32_0 : i32, i32
  }
  func.func @transform_4(%arg0: i32) -> (i32, i32) {
    %c0_i32 = arith.constant 0 : i32
    %c0_i32_0 = arith.constant 0 : i32
    return %arg0, %c0_i32 : i32, i32
  }
}

</mosaic_0001>

<bundles_post_ra>
// kernel: tpu_custom_call.1
= control target key start
LH: loop header
LB: loop body
LE: loop exit
PB: predicated region body
PF: predicated region fallthrough
CT: control target
= control target key end

     0   :  { %vm30_vm0 = vcmask 261120   ;;  %vm126_vm2 = vcmask 523264   ;;  %v317_v25 = vmov 0.0   ;;  %vm224_vm4 = vcmask 7168   ;;  %s397_s1 = inlined_call_operand.vmem [shape: f32[32,64], index: 1, kind: input, shape index: {}]   ;;  %s398_s0 = inlined_call_operand.vmem [shape: f32[16,32], index: 0, kind: input, shape index: {}]   ;;  %s399_s3 = inlined_call_operand.vmem [shape: f32[64,2], index: 3, kind: input, shape index: {}]   ;;  %s400_s2 = inlined_call_operand.vmem [shape: f32[1,64], index: 2, kind: input, shape index: {}]   ;;  %s401_s4 = inlined_call_operand.vmem [shape: s32[16,2], index: 4, kind: output, shape index: {}]  }
   0x1   :  { %v19_v0 = vld [vmem:[%s397_s1] sm:$0xff]  ;;  %v20_v1 = vld [vmem:[%s397_s1 + $0x8] sm:$0xff]  ;;  %v21_v2 = vld [vmem:[%s397_s1 + $0x10] sm:$0xff]  ;;  %vm227_vm5 = vcmask 15360  }
   0x2   :  { %v287_v3 = vpack.c.bf16 %v20_v1, %v19_v0  ;;  %v22_v4 = vld [vmem:[%s397_s1 + $0x18] sm:$0xff]  ;;  %v17_v5 = vld [vmem:[%s398_s0] sm:$0xff]  ;;  %v119_v8 = vld [vmem:[%s399_s3 + $0x8] sm:$0xff] }
   0x3   :  { %v291_v6 = vpack.c.bf16 %v22_v4, %v21_v2  ;;  %265 = vmatprep.mubr.msk.f32.mxu0 %vm30_vm0, %v17_v5  ;;  %v118_v7 = vld [vmem:[%s399_s3] sm:$0xff]  ;;  %v120_v9 = vld [vmem:[%s399_s3 + $0x10] sm:$0xff]  ;;  %v121_v11 = vld [vmem:[%s399_s3 + $0x18] sm:$0xff] }
   0x4   :  { %288 = vmatprep.subr.bf16.mxu0 %v287_v3  ;;  %v295_v10 = vpack.c.bf16 %v119_v8, %v118_v7  ;;  %v299_v12 = vpack.c.bf16 %v121_v11, %v120_v9  ;;  %v122_v13 = vld [vmem:[%s399_s3 + $0x20] sm:$0xff]  ;;  %v123_v14 = vld [vmem:[%s399_s3 + $0x28] sm:$0xff]  ;;  %v124_v17 = vld [vmem:[%s399_s3 + $0x30] sm:$0xff] }
   0x5   :  { %290 = vmatpush3.bf16.msra.mxu0 %v287_v3  ;;  %v303_v15 = vpack.c.bf16 %v123_v14, %v122_v13  ;;  %v18_v16 = vld [vmem:[%s398_s0 + $0x8] sm:$0xff]  ;;  %v125_v18 = vld [vmem:[%s399_s3 + $0x38] sm:$0xff]  ;;  %v234_v20 = vld [vmem:[%s400_s2] ss:$0 sm:$0xff]  ;;  %s318_s0 = smov 1  }
   0x6   :  { %292 = vmatprep.subr.bf16.mxu0 %v291_v6  ;;  %296 = vmatprep.subr.bf16.mxu1 %v295_v10  ;;  %v307_v19 = vpack.c.bf16 %v125_v18, %v124_v17 }
   0x7   :  { %298 = vmatpush3.bf16.msra.mxu1 %v295_v10 }
   0x8   :  { %300 = vmatprep.subr.bf16.mxu1 %v299_v12 }
   0x9   :  { %294 = vmatpush3.bf16.msra.mxu0 %v291_v6 }
   0xb   :  { %302 = vmatpush3.bf16.msra.mxu1 %v299_v12 }
   0xc   :  { %266 = vmatmul.mubr.msk.f32.vlgmr.msra.gmra.mrb[0].mxu0 %vm30_vm0, %v18_v16  ;;  %304 = vmatprep.subr.bf16.mxu1 %v303_v15 }
   0xf   :  { %306 = vmatpush3.bf16.msra.mxu1 %v303_v15 }
  0x10   :  { %308 = vmatprep.subr.bf16.mxu1 %v307_v19 }
  0x13   :  { %310 = vmatpush3.bf16.msra.mxu1 %v307_v19 }
  0xdf   :  { %v267_v21 = vpop.f32.mrb[0].mxu0 }
  0xe0   :  { %v109_v22 = vadd.f32 %v267_v21, %v234_v20  ;;  %v103_v23 = vpop.f32.mrb[1].mxu0 }
  0xe1   :  { %v104_v24 = vadd.f32 %v234_v20, %v103_v23 }
  0xe2   :  { %vm113_vm1 = vcmp.gt.f32.partialorder %v109_v22, 0.0 }
  0xe3   :  { %vm112_vm3 = vcmp.gt.f32.partialorder %v104_v24, 0.0  ;;  %v238_v27 = vsel %vm113_vm1, 1.0, %v317_v25 }
  0xe4   :  { %v237_v26 = vsel %vm112_vm3, 1.0, %v317_v25 }
  0xe5   :  { %284 = vmatprep.mubr.msk.f32.mxu1 %vm126_vm2, %v237_v26 }
  0xe6   :  { %285 = vmatmul.mubr.msk.f32.vlgmr.msra.gmra.mrb[0].mxu1 %vm126_vm2, %v238_v27 }
 0x1b9   :  { %v286_v28 = vpop.f32.mrb[0].mxu1 }
 0x1ba   :  { %v199_v29 = vpop.f32.mrb[1].mxu1  ;;  %v313_v30 = vtrunc.f32 %v286_v28 }
 0x1bb   :  { %v311_v31 = vtrunc.f32 %v199_v29 }
 0x1bc   :  { %v314_v33 = vcvt.f32.s32 %v313_v30 }
 0x1bd   :  { %v312_v32 = vcvt.f32.s32 %v311_v31 }
 0x1be   :  { %v211_v35 = vand.u32 7, %v314_v33 }
 0x1bf   :  { %v210_v34 = vand.u32 7, %v312_v32 }
 0x1c0   :  { %v219_v39 = vadd.s32 1, %v211_v35 }
 0x1c1   :  { %212 = vrot.lane.b32.xlu0 %v210_v34, %s318_s0  ;;  %v218_v36 = vadd.s32 1, %v210_v34 }
 0x1c2   :  { %v221_v42 = vand.u32 7, %v219_v39 }
 0x1c3   :  { %v220_v38 = vand.u32 7, %v218_v36 }
 0x1c5   :  { %214 = vrot.lane.b32.xlu0 %v211_v35, %s318_s0 }
 0x233   :  { %v213_v37 = vpop.permute.xlu0 %212 }
 0x234   :  { %vm216_vm6 = vcmp.eq.s32.totalorder %v210_v34, %v213_v37 }
 0x235   :  { %v222_v40 = vsel %vm216_vm6, %v220_v38, %v210_v34 }
 0x236   :  { %v225_v41 = vsel %vm224_vm4, %v210_v34, %v222_v40 }
 0x237   :  { %228 = vst.msk [vmem:[%s401_s4] sm:$0xff] %vm227_vm5, %v225_v41  ;;  %v215_v43 = vpop.permute.xlu0 %214 }
 0x238   :  { %vm217_vm7 = vcmp.eq.s32.totalorder %v211_v35, %v215_v43 }
 0x239   :  { %v223_v44 = vsel %vm217_vm7, %v221_v42, %v211_v35 }
 0x23a   :  { %v226_v45 = vsel %vm224_vm4, %v211_v35, %v223_v44 }
 0x23b   :  { %229 = vst.msk [vmem:[%s401_s4 + $0x8] sm:$0xff] %vm227_vm5, %v226_v45 }

</bundles_post_ra>
